<compile_context>
chip_gen: v6e
topology: v6e:2x2x1
jax: 0.10.0
libtpu: 0.0.40
codegen_flags: <defaults>
</compile_context>

<pallas_src>
import jax
import jax.numpy as jnp
from jax import lax
from jax.experimental import pallas as pl
from jax.experimental.pallas import tpu as pltpu


_VMEM_LIMIT = 64 * 1024 * 1024   # safe scoped limit on v5e/v6e (128 MiB) and v7x (64 MiB)


# ----------------------------------------------------------------------------
# small helpers (padding / tile selection)
# ----------------------------------------------------------------------------
def _pad2(x, row_mult, col_mult):
    r, c = x.shape
    pr = (-r) % row_mult
    pc = (-c) % col_mult
    if pr == 0 and pc == 0:
        return x
    return jnp.pad(x, ((0, pr), (0, pc)))


def _pad_last(x, mult=128):
    pad = (-x.shape[-1]) % mult
    if pad == 0:
        return x
    widths = [(0, 0)] * (x.ndim - 1) + [(0, pad)]
    return jnp.pad(x, widths)


def _pick_tile(n, candidates=(512, 256, 128)):
    for t in candidates:
        if n % t == 0:
            return t
    return n


def _row_tile(n):
    if n >= 256:
        return 256
    return max(8, ((n + 7) // 8) * 8)


# ----------------------------------------------------------------------------
# Pallas kernels
# ----------------------------------------------------------------------------
def _entropy_kernel(q_ref, f_ref, ent_ref):
    # q_ref: (1, TQ, Cp) query tile.  f_ref: (1, L, Cp) all keys (resident per
    # batch).  ent_ref: (1, 1, TQ) lane-dense per-query softmax entropy.
    q = q_ref[0].astype(jnp.bfloat16)
    f = f_ref[0].astype(jnp.bfloat16)
    # dots[l, t] = <f[l, :], q[t, :]>  (keys on sublanes, queries on lanes);
    # NT dot_general -> MXU directly, no explicit transpose.
    dots = lax.dot_general(f, q, (((1,), (1,)), ((), ())),
                           preferred_element_type=jnp.float32)      # (L, TQ)
    m = jnp.max(dots, axis=0, keepdims=True)                        # (1, TQ)
    c = dots - m
    e = jnp.exp(c)
    z = jnp.sum(e, axis=0, keepdims=True)                           # (1, TQ)
    s = jnp.sum(e * c, axis=0, keepdims=True)                       # (1, TQ)
    # entropy = -sum p log p = log(z) - sum(e * c) / z  (one log per query)
    ent_ref[0] = jnp.log(z) - s * pl.reciprocal(z, approx=True)


def attn_entropy_only(feat_reshape):
    """feat_reshape (B, L, C) -> per-row softmax entropy (B, L) f32.

    Never materializes the (B, L, L) attention matrix."""
    B, L, C = feat_reshape.shape
    f = _pad_last(feat_reshape.astype(jnp.float32))                 # (B, L, Cp)
    Cp = f.shape[-1]
    tq = _pick_tile(L, candidates=(256, 128))
    # TODO(synk): for very large L the resident (L, Cp) key block / (L, TQ)
    # dots tile should additionally be key-tiled with an online-softmax pass.
    ent = pl.pallas_call(
        _entropy_kernel,
        out_shape=jax.ShapeDtypeStruct((B, 1, L), jnp.float32),
        grid=(B, L // tq),
        in_specs=[pl.BlockSpec((1, tq, Cp), lambda b, q: (b, q, 0)),
                  pl.BlockSpec((1, L, Cp), lambda b, q: (b, 0, 0))],
        out_specs=pl.BlockSpec((1, 1, tq), lambda b, q: (b, 0, q)),
        compiler_params=pltpu.CompilerParams(
            dimension_semantics=("parallel", "parallel"),
            vmem_limit_bytes=_VMEM_LIMIT),
    )(f, f)
    return ent[:, 0, :]


def _rowsoftmax_agg_kernel(q_ref, f_ref, attn_ref, agg_ref):
    # q_ref: (1, P, Cp) selected query rows.  f_ref: (1, L, Cp) all keys.
    # attn_ref: (1, P, L) softmax rows.  agg_ref: (1, P, Cp) = attn @ F.
    q = q_ref[0].astype(jnp.bfloat16)
    f = f_ref[0].astype(jnp.bfloat16)
    dots = lax.dot_general(q, f, (((1,), (1,)), ((), ())),
                           preferred_element_type=jnp.float32)      # (P, L)
    m = jnp.max(dots, axis=-1, keepdims=True)
    e = jnp.exp(dots - m)
    z = jnp.sum(e, axis=-1, keepdims=True)                          # (P, 1)
    attn = e * pl.reciprocal(z, approx=True)
    attn_ref[0] = attn
    agg_ref[0] = jnp.dot(attn.astype(jnp.bfloat16), f,
                         preferred_element_type=jnp.float32)


def rowsoftmax_agg(q_sel, feat_reshape):
    """Softmax of only the P selected rows of F F^T, fused with (attn @ F).

    q_sel (B, P, C), feat_reshape (B, L, C) ->
      attn (B, P, L) f32  [== gather of softmax(F F^T, dim=2) rows]
      agg  (B, P, C) f32  [== bmm(attn, feat_reshape)]"""
    B, P, C = q_sel.shape
    _, L, _ = feat_reshape.shape
    qp = _pad_last(q_sel.astype(jnp.float32))
    fp = _pad_last(feat_reshape.astype(jnp.float32))
    Cp = fp.shape[-1]
    # TODO(synk): for very large L, key-tile with an online softmax + post
    # rescale of the stored attention rows.
    attn, agg = pl.pallas_call(
        _rowsoftmax_agg_kernel,
        out_shape=(jax.ShapeDtypeStruct((B, P, L), jnp.float32),
                   jax.ShapeDtypeStruct((B, P, Cp), jnp.float32)),
        grid=(B,),
        in_specs=[pl.BlockSpec((1, P, Cp), lambda b: (b, 0, 0)),
                  pl.BlockSpec((1, L, Cp), lambda b: (b, 0, 0))],
        out_specs=(pl.BlockSpec((1, P, L), lambda b: (b, 0, 0)),
                   pl.BlockSpec((1, P, Cp), lambda b: (b, 0, 0))),
        compiler_params=pltpu.CompilerParams(
            dimension_semantics=("parallel",),
            vmem_limit_bytes=_VMEM_LIMIT),
    )(qp, fp)
    return attn, agg[..., :C]


def _bmm_kernel(a_ref, b_ref, o_ref, acc_ref):
    @pl.when(pl.program_id(1) == 0)
    def _():
        acc_ref[...] = jnp.zeros_like(acc_ref)

    acc_ref[...] += jnp.dot(a_ref[0].astype(jnp.bfloat16),
                            b_ref[0].astype(jnp.bfloat16),
                            preferred_element_type=jnp.float32)

    @pl.when(pl.program_id(1) == pl.num_programs(1) - 1)
    def _():
        o_ref[0] = acc_ref[...]


def bmm(a, b):
    """torch.bmm equivalent: a (B, P, L) @ b (B, L, C) -> (B, P, C), with the
    L reduction tiled across the grid (f32 VMEM accumulator)."""
    B, P, L = a.shape
    _, _, C = b.shape
    bp = _pad_last(b.astype(jnp.float32))
    Cp = bp.shape[-1]
    tk = _pick_tile(L)
    out = pl.pallas_call(
        _bmm_kernel,
        out_shape=jax.ShapeDtypeStruct((B, P, Cp), jnp.float32),
        grid=(B, L // tk),
        in_specs=[pl.BlockSpec((1, P, tk), lambda i, k: (i, 0, k)),
                  pl.BlockSpec((1, tk, Cp), lambda i, k: (i, k, 0))],
        out_specs=pl.BlockSpec((1, P, Cp), lambda i, k: (i, 0, 0)),
        scratch_shapes=[pltpu.VMEM((P, Cp), jnp.float32)],
        compiler_params=pltpu.CompilerParams(
            dimension_semantics=("parallel", "arbitrary"),
            vmem_limit_bytes=_VMEM_LIMIT),
    )(a.astype(jnp.float32), bp)
    return out[..., :C]


def _mlp_l2norm_kernel(x_ref, w1_ref, b1_ref, w2_ref, b2_ref, o_ref):
    # x: (TN, Cp)  w1: (Cp, Hp)  b1: (1, Hp)  w2: (Hp, Hp)  b2: (1, Hp)
    x = x_ref[...].astype(jnp.bfloat16)
    h = jnp.dot(x, w1_ref[...].astype(jnp.bfloat16),
                preferred_element_type=jnp.float32) + b1_ref[...]
    h = jnp.maximum(h, 0.0)                                          # ReLU
    y = jnp.dot(h.astype(jnp.bfloat16), w2_ref[...].astype(jnp.bfloat16),
                preferred_element_type=jnp.float32) + b2_ref[...]
    norm = jnp.sqrt(jnp.sum(y * y, axis=1, keepdims=True))           # (TN, 1)
    o_ref[...] = y * (1.0 / (norm + 1e-7))       # column recip, row broadcast


def mlp_l2norm(x, w1, b1, w2, b2):
    N, C = x.shape
    H = w1.shape[1]
    xp = _pad_last(x.astype(jnp.float32))
    w1p = _pad2(w1.astype(jnp.float32), 128, 128)
    w2p = _pad2(w2.astype(jnp.float32), 128, 128)
    b1p = _pad2(b1.astype(jnp.float32), 1, 128)
    b2p = _pad2(b2.astype(jnp.float32), 1, 128)
    Cp, Hp = w1p.shape
    tn = _row_tile(N)
    Np = ((N + tn - 1) // tn) * tn
    if Np != N:
        xp = jnp.pad(xp, ((0, Np - N), (0, 0)))
    out = pl.pallas_call(
        _mlp_l2norm_kernel,
        out_shape=jax.ShapeDtypeStruct((Np, Hp), jnp.float32),
        grid=(Np // tn,),
        in_specs=[pl.BlockSpec((tn, Cp), lambda i: (i, 0)),
                  pl.BlockSpec((Cp, Hp), lambda i: (0, 0)),
                  pl.BlockSpec((1, Hp), lambda i: (0, 0)),
                  pl.BlockSpec((Hp, Hp), lambda i: (0, 0)),
                  pl.BlockSpec((1, Hp), lambda i: (0, 0))],
        out_specs=pl.BlockSpec((tn, Hp), lambda i: (i, 0)),
        compiler_params=pltpu.CompilerParams(
            dimension_semantics=("parallel",)),
    )(xp, w1p, b1p, w2p, b2p)
    return out[:N, :H]


def _l2norm_kernel(x_ref, o_ref):
    x = x_ref[...]
    norm = jnp.sqrt(jnp.sum(x * x, axis=1, keepdims=True))
    o_ref[...] = x * (1.0 / (norm + 1e-7))


def l2norm(x):
    N, C = x.shape
    xp = _pad_last(x.astype(jnp.float32))
    Cp = xp.shape[-1]
    tn = _row_tile(N)
    Np = ((N + tn - 1) // tn) * tn
    if Np != N:
        xp = jnp.pad(xp, ((0, Np - N), (0, 0)))
    out = pl.pallas_call(
        _l2norm_kernel,
        out_shape=jax.ShapeDtypeStruct((Np, Cp), jnp.float32),
        grid=(Np // tn,),
        in_specs=[pl.BlockSpec((tn, Cp), lambda i: (i, 0))],
        out_specs=pl.BlockSpec((tn, Cp), lambda i: (i, 0)),
        compiler_params=pltpu.CompilerParams(
            dimension_semantics=("parallel",)),
    )(xp)
    return out[:N, :C]


# ----------------------------------------------------------------------------
# Parameter setup (deterministic; matches nn.Linear shapes + 'normal' init)
# ----------------------------------------------------------------------------
def init_mlp_params(key, input_ncs, nc, init_gain=0.02):
    """Per-feat MLP: Linear(input_nc, nc) -> ReLU -> Linear(nc, nc).
    Weights ~ N(0, init_gain), biases = 0 (init_weights 'normal')."""
    params = []
    for input_nc in input_ncs:
        key, k1, k2 = jax.random.split(key, 3)
        w1 = init_gain * jax.random.normal(k1, (input_nc, nc), jnp.float32)
        b1 = jnp.zeros((1, nc), jnp.float32)
        w2 = init_gain * jax.random.normal(k2, (nc, nc), jnp.float32)
        b2 = jnp.zeros((1, nc), jnp.float32)
        params.append((w1, b1, w2, b2))
    return params


# ----------------------------------------------------------------------------
# PatchSampleF.forward
# ----------------------------------------------------------------------------
def patch_sample_f_forward(feats, *, num_patches=64, patch_ids=None,
                           attn_mats=None, use_mlp=False, mlp_params=None,
                           rng=None):
    return_ids, return_feats, return_mats = [], [], []
    for feat_id, feat in enumerate(feats):
        B, C, H, W = feat.shape
        L = H * W
        # NCHW -> (B, H*W, C)
        feat_reshape = jnp.transpose(feat, (0, 2, 3, 1)).reshape(B, L, C)

        if num_patches > 0:
            if feat_id < 3:
                if patch_ids is not None:
                    patch_id = patch_ids[feat_id]
                else:
                    rng, sub = jax.random.split(rng)
                    patch_id = jax.random.permutation(sub, L)[
                        :int(min(num_patches, L))]
                x_sample = feat_reshape[:, patch_id, :].reshape(-1, C)
                attn_qs = jnp.zeros((1,), jnp.float32)
            else:
                if attn_mats is not None:
                    attn_qs = attn_mats[feat_id]
                    feat_agg = bmm(attn_qs, feat_reshape)            # Pallas
                else:
                    entropy = attn_entropy_only(feat_reshape)        # Pallas
                    index = jnp.argsort(entropy, axis=1)             # torch.sort
                    pid = index[:, :num_patches]                     # (B, P)
                    # cheap (B, P, C) gather of the selected query rows
                    q_sel = jnp.take_along_axis(
                        feat_reshape, pid[:, :, None], axis=1)
                    attn_qs, feat_agg = rowsoftmax_agg(q_sel, feat_reshape)
                x_sample = feat_agg.reshape(-1, C)
                patch_id = []
        else:
            # TODO(synk): num_patches == 0 path is undefined in the reference
            # (attn_qs is used before assignment) and is not implemented here.
            raise NotImplementedError("num_patches == 0 path not supported")

        if use_mlp:
            w1, b1, w2, b2 = mlp_params[feat_id]
            x_sample = mlp_l2norm(x_sample, w1, b1, w2, b2)          # Pallas
        else:
            x_sample = l2norm(x_sample)                              # Pallas

        return_ids.append(patch_id)
        return_mats.append(attn_qs)
        return_feats.append(x_sample)
    return return_feats, return_ids, return_mats


# ----------------------------------------------------------------------------
# Demo + sanity checks
# ----------------------------------------------------------------------------
if __name__ == "__main__":
    key = jax.random.PRNGKey(0)
    B, H, W = 2, 8, 8
    num_patches = 16
    nc = 32
    channels = [4, 8, 8, 8]           # feat_id 3 triggers the attention path
    L = H * W

    keys = jax.random.split(key, len(channels) + 2)
    feats = [jax.random.normal(keys[i], (B, channels[i], H, W), jnp.float32)
             for i in range(len(channels))]
    mlp_params = init_mlp_params(keys[-2], channels, nc)
    rng_forward = keys[-1]

    # Full forward (use_mlp=True exercises the fused MLP kernel)
    out_feats, out_ids, out_mats = patch_sample_f_forward(
        feats, num_patches=num_patches, use_mlp=True,
        mlp_params=mlp_params, rng=rng_forward)
    jax.block_until_ready(out_feats)

    # --- sanity checks against plain-JAX references (same inputs) ---
    fr3 = jnp.transpose(feats[3], (0, 2, 3, 1)).reshape(B, L, channels[3])

    # reference attention / entropy (torch formula)
    dots_r = jnp.einsum('blc,bmc->blm', fr3, fr3)
    attn_r = jax.nn.softmax(dots_r, axis=2)
    prob_r = jnp.where(attn_r > 0.0, -jnp.log(attn_r), 0.0)
    ent_r = jnp.sum(attn_r * prob_r, axis=2)

    # entropy-only kernel (bf16 MXU -> loose tolerance)
    ent_p = attn_entropy_only(fr3)
    assert ent_p.shape == (B, L)
    assert jnp.allclose(ent_p, ent_r, atol=5e-2, rtol=5e-2)

    # fused selected-row softmax + aggregation kernel
    pid_r = jnp.argsort(ent_r, axis=1)[:, :num_patches]
    q_sel_r = jnp.take_along_axis(fr3, pid_r[:, :, None], axis=1)
    attn_p, agg_p = rowsoftmax_agg(q_sel_r, fr3)
    attn_rows_r = jnp.take_along_axis(attn_r, pid_r[:, :, None], axis=1)
    agg_r = jnp.einsum('bpl,blc->bpc', attn_rows_r, fr3)
    assert jnp.allclose(attn_p, attn_rows_r, atol=5e-2, rtol=5e-2)
    assert jnp.allclose(agg_p, agg_r, atol=5e-2, rtol=5e-2)

    # bmm kernel (attn_mats reuse path) vs a bf16-operand XLA reference
    a = jax.random.normal(jax.random.PRNGKey(1), (B, num_patches, L))
    b = jax.random.normal(jax.random.PRNGKey(2), (B, L, channels[3]))
    bmm_r = jnp.einsum('bpl,blc->bpc', a.astype(jnp.bfloat16),
                       b.astype(jnp.bfloat16),
                       preferred_element_type=jnp.float32)
    assert jnp.allclose(bmm(a, b), bmm_r, atol=3e-2, rtol=3e-2)

    # MLP + l2norm kernel
    x = jax.random.normal(jax.random.PRNGKey(3),
                          (B * num_patches, channels[0]))
    w1, b1, w2, b2 = mlp_params[0]
    y_p = mlp_l2norm(x, w1, b1, w2, b2)
    h_r = jnp.maximum(jnp.dot(x, w1) + b1, 0.0)
    y_r = jnp.dot(h_r, w2) + b2
    y_r = y_r / (jnp.sqrt(jnp.sum(y_r * y_r, axis=1, keepdims=True)) + 1e-7)
    assert jnp.allclose(y_p, y_r, atol=3e-2, rtol=3e-2)

    # l2norm kernel (pure f32, tight tolerance)
    z = jax.random.normal(jax.random.PRNGKey(4),
                          (B * num_patches, channels[0]))
    z_r = z / (jnp.sqrt(jnp.sum(z * z, axis=1, keepdims=True)) + 1e-7)
    assert jnp.allclose(l2norm(z), z_r, atol=1e-4, rtol=1e-4)

    # forward output shapes / finiteness
    for f in out_feats:
        assert f.shape == (B * num_patches, nc)
        assert bool(jnp.all(jnp.isfinite(f)))
    assert out_mats[3].shape == (B, num_patches, L)

    # patch_ids / attn_mats reuse path (exercises the tiled bmm in-forward)
    out_feats2, _, _ = patch_sample_f_forward(
        feats, num_patches=num_patches, patch_ids=out_ids,
        attn_mats=out_mats, use_mlp=True, mlp_params=mlp_params, rng=None)
    jax.block_until_ready(out_feats2)
    for f1, f2 in zip(out_feats, out_feats2):
        assert f1.shape == f2.shape
    assert jnp.allclose(out_feats[0], out_feats2[0], atol=1e-5, rtol=1e-5)
    assert jnp.allclose(out_feats[3], out_feats2[3], atol=3e-2, rtol=3e-2)

    print("KERNEL_OK")
</pallas_src>

<mosaic_0001>
module attributes {stable_mosaic.version = 11 : i64} {
  func.func @_mlp_l2norm_kernel(%arg0: i32, %arg1: memref<32x128xf32, #tpu.memory_space<vmem>>, %arg2: memref<128x128xf32, #tpu.memory_space<vmem>>, %arg3: memref<1x128xf32, #tpu.memory_space<vmem>>, %arg4: memref<128x128xf32, #tpu.memory_space<vmem>>, %arg5: memref<1x128xf32, #tpu.memory_space<vmem>>, %arg6: memref<32x128xf32, #tpu.memory_space<vmem>>) attributes {dimension_semantics = [#tpu.dimension_semantics<parallel>], iteration_bounds = array<i64: 1>, scalar_prefetch = 0 : i64, scratch_operands = 0 : i64, tpu.core_type = #tpu.core_type<tc>, window_params = [{transform_indices = @transform_0, window_bounds = array<i64: 32, 128>}, {pipeline_mode = #tpu.pipeline_mode<synchronous>, transform_indices = @transform_1, window_bounds = array<i64: 128, 128>}, {pipeline_mode = #tpu.pipeline_mode<synchronous>, transform_indices = @transform_2, window_bounds = array<i64: 1, 128>}, {pipeline_mode = #tpu.pipeline_mode<synchronous>, transform_indices = @transform_3, window_bounds = array<i64: 128, 128>}, {pipeline_mode = #tpu.pipeline_mode<synchronous>, transform_indices = @transform_4, window_bounds = array<i64: 1, 128>}, {transform_indices = @transform_5, window_bounds = array<i64: 32, 128>}]} {
    %c0 = arith.constant 0 : index
    %c0_0 = arith.constant 0 : index
    %0 = vector.load %arg1[%c0, %c0_0] : memref<32x128xf32, #tpu.memory_space<vmem>>, vector<32x128xf32>
    %1 = arith.truncf %0 : vector<32x128xf32> to vector<32x128xbf16>
    %c0_1 = arith.constant 0 : index
    %c0_2 = arith.constant 0 : index
    %2 = vector.load %arg2[%c0_1, %c0_2] : memref<128x128xf32, #tpu.memory_space<vmem>>, vector<128x128xf32>
    %3 = arith.truncf %2 : vector<128x128xf32> to vector<128x128xbf16>
    %cst = arith.constant dense<0.000000e+00> : vector<32x128xf32>
    %4 = tpu.matmul %1, %3, %cst {dimension_numbers = #tpu.dot_dimension_numbers<[1], [0], [0], [1], [0, 0, 1, 1], [], []>} : vector<32x128xbf16>, vector<128x128xbf16>, vector<32x128xf32> -> vector<32x128xf32>
    %c0_3 = arith.constant 0 : index
    %c0_4 = arith.constant 0 : index
    %5 = vector.load %arg3[%c0_3, %c0_4] : memref<1x128xf32, #tpu.memory_space<vmem>>, vector<1x128xf32>
    %6 = vector.broadcast %5 : vector<1x128xf32> to vector<32x128xf32>
    %7 = arith.addf %4, %6 : vector<32x128xf32>
    %cst_5 = arith.constant 0.000000e+00 : f32
    %8 = vector.broadcast %cst_5 : f32 to vector<32x128xf32>
    %9 = arith.maximumf %7, %8 : vector<32x128xf32>
    %10 = arith.truncf %9 : vector<32x128xf32> to vector<32x128xbf16>
    %c0_6 = arith.constant 0 : index
    %c0_7 = arith.constant 0 : index
    %11 = vector.load %arg4[%c0_6, %c0_7] : memref<128x128xf32, #tpu.memory_space<vmem>>, vector<128x128xf32>
    %12 = arith.truncf %11 : vector<128x128xf32> to vector<128x128xbf16>
    %cst_8 = arith.constant dense<0.000000e+00> : vector<32x128xf32>
    %13 = tpu.matmul %10, %12, %cst_8 {dimension_numbers = #tpu.dot_dimension_numbers<[1], [0], [0], [1], [0, 0, 1, 1], [], []>} : vector<32x128xbf16>, vector<128x128xbf16>, vector<32x128xf32> -> vector<32x128xf32>
    %c0_9 = arith.constant 0 : index
    %c0_10 = arith.constant 0 : index
    %14 = vector.load %arg5[%c0_9, %c0_10] : memref<1x128xf32, #tpu.memory_space<vmem>>, vector<1x128xf32>
    %15 = vector.broadcast %14 : vector<1x128xf32> to vector<32x128xf32>
    %16 = arith.addf %13, %15 : vector<32x128xf32>
    %17 = arith.mulf %16, %16 : vector<32x128xf32>
    %cst_11 = arith.constant dense<0.000000e+00> : vector<32xf32>
    %18 = vector.multi_reduction <add>, %17, %cst_11 [1] : vector<32x128xf32> to vector<32xf32>
    %19 = vector.shape_cast %18 : vector<32xf32> to vector<32x1xf32>
    %20 = math.sqrt %19 : vector<32x1xf32>
    %cst_12 = arith.constant 1.000000e-07 : f32
    %21 = vector.broadcast %cst_12 : f32 to vector<32x1xf32>
    %22 = arith.addf %20, %21 : vector<32x1xf32>
    %cst_13 = arith.constant 1.000000e+00 : f32
    %23 = vector.broadcast %cst_13 : f32 to vector<32x1xf32>
    %24 = arith.divf %23, %22 : vector<32x1xf32>
    %25 = vector.broadcast %24 : vector<32x1xf32> to vector<32x128xf32>
    %26 = arith.mulf %16, %25 : vector<32x128xf32>
    %c0_14 = arith.constant 0 : index
    %c0_15 = arith.constant 0 : index
    %27 = vector.load %arg6[%c0_14, %c0_15] : memref<32x128xf32, #tpu.memory_space<vmem>>, vector<32x128xf32>
    tpu.vector_store %arg6[%c0_14, %c0_15], %26 {strides = array<i32>} : memref<32x128xf32, #tpu.memory_space<vmem>>, vector<32x128xf32>,
    return
  }
  func.func @transform_0(%arg0: i32) -> (i32, i32) {
    %c0_i32 = arith.constant 0 : i32
    %c0_i32_0 = arith.constant 0 : i32
    return %arg0, %c0_i32 : i32, i32
  }
  func.func @transform_1(%arg0: i32) -> (i32, i32) {
    %c0_i32 = arith.constant 0 : i32
    %c0_i32_0 = arith.constant 0 : i32
    %c0_i32_1 = arith.constant 0 : i32
    return %c0_i32, %c0_i32_0 : i32, i32
  }
  func.func @transform_2(%arg0: i32) -> (i32, i32) {
    %c0_i32 = arith.constant 0 : i32
    %c0_i32_0 = arith.constant 0 : i32
    %c0_i32_1 = arith.constant 0 : i32
    return %c0_i32, %c0_i32_0 : i32, i32
  }
  func.func @transform_3(%arg0: i32) -> (i32, i32) {
    %c0_i32 = arith.constant 0 : i32
    %c0_i32_0 = arith.constant 0 : i32
    %c0_i32_1 = arith.constant 0 : i32
    return %c0_i32, %c0_i32_0 : i32, i32
  }
  func.func @transform_4(%arg0: i32) -> (i32, i32) {
    %c0_i32 = arith.constant 0 : i32
    %c0_i32_0 = arith.constant 0 : i32
    %c0_i32_1 = arith.constant 0 : i32
    return %c0_i32, %c0_i32_0 : i32, i32
  }
  func.func @transform_5(%arg0: i32) -> (i32, i32) {
    %c0_i32 = arith.constant 0 : i32
    %c0_i32_0 = arith.constant 0 : i32
    return %arg0, %c0_i32 : i32, i32
  }
}

</mosaic_0001>

<bundles_post_ra>
// kernel: tpu_custom_call.1
= control target key start
LH: loop header
LB: loop body
LE: loop exit
PB: predicated region body
PF: predicated region fallthrough
CT: control target
= control target key end

     0   :  { %10 = vsyncpa [#allocation3], 0  ;;  %s549_s0 = inlined_call_operand.hbm [shape: f32[32,128], index: 0, kind: input, shape index: {}]   ;;  %s550_s1 = inlined_call_operand.hbm [shape: f32[128,128], index: 1, kind: input, shape index: {}]   ;;  %s551_s2 = inlined_call_operand.vmem [shape: f32[1,128], index: 2, kind: input, shape index: {}]   ;;  %s552_s3 = inlined_call_operand.hbm [shape: f32[128,128], index: 3, kind: input, shape index: {}]   ;;  %s553_s4 = inlined_call_operand.vmem [shape: f32[1,128], index: 4, kind: input, shape index: {}]   ;;  %s554_s5 = inlined_call_operand.hbm [shape: f32[32,128], index: 5, kind: output, shape index: {}]  }
   0x1   :  { %11 = vsyncpa [#allocation6], 0 }
   0x2   :  { %12 = vsyncpa [#allocation4], 0  ;;  %s483_s18 = smov [#allocation5]   ;;  %s484_s20 = smov [#allocation2]  }
   0x3   :  { %s30_s19 = sshll.u32 %s483_s18, 4  ;;  %s18_s21 = sshll.u32 %s484_s20, 4  ;;  %s31_s19 = int_to_ptr.vmem [resolvable:$true] %s30_s19  ;;  %s19_s21 = int_to_ptr.vmem [resolvable:$true] %s18_s21 }
   0x4   :  { %s405_s22 = scalar_lea.vmem %s31_s19, 2048  ;;  %p410_p1 = scmp.lt.s32.totalorder %s31_s19, %s31_s19 }
   0x5   :  { %p406_p0 = scmp.ne.s32.totalorder %s31_s19, %s405_s22  ;;  %p411_p2 = scmp.lt.s32.totalorder %s405_s22, %s405_s22 }
   0x7   :  { %p412_p3 = por %p411_p2, %p410_p1 }
   0x9   :  { %p413_p4 = pnand %p412_p3, %p406_p0 }
   0xb   :  { %416 = shalt.err (!%p413_p4)
}
   0xc   :  { %s485_s23 = smov 128   ;;  %s486_s24 = smov 8  }
   0xd   :  { %36 = dma.hbm_to_vmem [thread:$0]  %s550_s1, 2048, %s31_s19, [#allocation6], %s485_s23, %s485_s23, %s486_s24  }
   0xe   :  { %s425_s27 = scalar_lea.vmem %s19_s21, 512  ;;  %p430_p6 = scmp.lt.s32.totalorder %s19_s21, %s19_s21 }
   0xf   :  { %p426_p5 = scmp.ne.s32.totalorder %s19_s21, %s425_s27  ;;  %p431_p7 = scmp.lt.s32.totalorder %s425_s27, %s425_s27 }
  0x11   :  { %p432_p8 = por %p431_p7, %p430_p6 }
  0x13   :  { %p433_p9 = pnand %p432_p8, %p426_p5 }
  0x15   :  { %436 = shalt.err (!%p433_p9)
}
  0x16   :  { %24 = dma.hbm_to_vmem [thread:$0]  %s549_s0, 512, %s19_s21, [#allocation3], %s485_s23, %s485_s23, %s486_s24  }
  0x17   :  { %s487_s30 = smov [#allocation7]  }
  0x18   :  { %s44_s6 = sshll.u32 %s487_s30, 4  ;;  %s45_s6 = int_to_ptr.vmem [resolvable:$true] %s44_s6 }
  0x19   :  { %s445_s7 = scalar_lea.vmem %s45_s6, 2048  ;;  %p450_p11 = scmp.lt.s32.totalorder %s45_s6, %s45_s6 }
  0x1a   :  { %p446_p10 = scmp.ne.s32.totalorder %s45_s6, %s445_s7  ;;  %p451_p12 = scmp.lt.s32.totalorder %s445_s7, %s445_s7 }
  0x1c   :  { %p452_p13 = por %p451_p12, %p450_p11 }
  0x1e   :  { %p453_p0 = pnand %p452_p13, %p446_p10 }
  0x20   :  { %456 = shalt.err (!%p453_p0)
}
  0x21   :  { %50 = dma.hbm_to_vmem [thread:$0]  %s552_s3, 2048, %s45_s6, [#allocation6], %s485_s23, %s485_s23, %s486_s24  }
  0x22   :  { %477 = dma.done.wait [#allocation3], 512  }
  0x23   :  { %478 = vsyncadd [#allocation3], 4294966784 }
  0x24   :  { %479 = dma.done.wait [#allocation6], 4096  }
  0x25   :  { %480 = vsyncadd [#allocation6], 4294963200  ;;  %v83_v0 = vld [vmem:[#allocation5 + $0x70] sm:$0xff]  ;;  %v84_v1 = vld [vmem:[#allocation5 + $0x78] sm:$0xff] }
  0x26   :  { %v81_v2 = vld [vmem:[#allocation5 + $0x60] sm:$0xff]  ;;  %v92_v3 = vpack.c.bf16 %v84_v1, %v83_v0  ;;  %v82_v4 = vld [vmem:[#allocation5 + $0x68] sm:$0xff]  ;;  %v79_v6 = vld [vmem:[#allocation5 + $0x50] sm:$0xff] }
  0x27   :  { %v91_v5 = vpack.c.bf16 %v82_v4, %v81_v2  ;;  %v80_v7 = vld [vmem:[#allocation5 + $0x58] sm:$0xff]  ;;  %v63_v9 = vld [vmem:[#allocation2] sm:$0xff]  ;;  %v64_v10 = vld [vmem:[#allocation2 + $0x8] sm:$0xff] }
  0x28   :  { %335 = vmatprep.subr.bf16.mxu0 %v92_v3  ;;  %v90_v8 = vpack.c.bf16 %v80_v7, %v79_v6  ;;  %v77_v11 = vld [vmem:[#allocation5 + $0x40] sm:$0xff]  ;;  %v78_v12 = vld [vmem:[#allocation5 + $0x48] sm:$0xff]  ;;  %v67_v13 = vpack.c.bf16 %v64_v10, %v63_v9  ;;  %v169_v14 = vld [vmem:[#allocation7 + $0x70] sm:$0xff] }
  0x29   :  { %336 = vmatpush3.bf16.msra.mxu0 %v92_v3  ;;  %v170_v15 = vld [vmem:[#allocation7 + $0x78] sm:$0xff]  ;;  %v167_v16 = vld [vmem:[#allocation7 + $0x60] sm:$0xff]  ;;  %v168_v17 = vld [vmem:[#allocation7 + $0x68] sm:$0xff]  ;;  %v89_v20 = vpack.c.bf16 %v78_v12, %v77_v11 }
  0x2a   :  { %337 = vmatprep.subr.bf16.mxu0 %v91_v5  ;;  %351 = vmatprep.mubr.bf16.mxu0 %v67_v13  ;;  %v178_v18 = vpack.c.bf16 %v170_v15, %v169_v14  ;;  %v177_v19 = vpack.c.bf16 %v168_v17, %v167_v16  ;;  %v165_v21 = vld [vmem:[#allocation7 + $0x50] sm:$0xff]  ;;  %v166_v22 = vld [vmem:[#allocation7 + $0x58] sm:$0xff]  ;;  %v163_v27 = vld [vmem:[#allocation7 + $0x40] sm:$0xff] }
  0x2b   :  { %v75_v23 = vld [vmem:[#allocation5 + $0x30] sm:$0xff]  ;;  %v76_v24 = vld [vmem:[#allocation5 + $0x38] sm:$0xff]  ;;  %v176_v25 = vpack.c.bf16 %v166_v22, %v165_v21  ;;  %v164_v28 = vld [vmem:[#allocation7 + $0x48] sm:$0xff] }
  0x2c   :  { %355 = vmatprep.subr.bf16.mxu1 %v178_v18  ;;  %v88_v26 = vpack.c.bf16 %v76_v24, %v75_v23  ;;  %v73_v29 = vld [vmem:[#allocation5 + $0x20] sm:$0xff]  ;;  %v74_v30 = vld [vmem:[#allocation5 + $0x28] sm:$0xff]  ;;  %v175_v31 = vpack.c.bf16 %v164_v28, %v163_v27  ;;  %v161_v33 = vld [vmem:[#allocation7 + $0x30] sm:$0xff] }
  0x2d   :  { %338 = vmatpush3.bf16.msra.mxu0 %v91_v5  ;;  %356 = vmatpush3.bf16.msra.mxu1 %v178_v18  ;;  %v87_v32 = vpack.c.bf16 %v74_v30, %v73_v29  ;;  %v162_v34 = vld [vmem:[#allocation7 + $0x38] sm:$0xff]  ;;  %v71_v35 = vld [vmem:[#allocation5 + $0x10] sm:$0xff]  ;;  %v69_v39 = vld [vmem:[#allocation5] sm:$0xff] }
  0x2e   :  { %339 = vmatprep.subr.bf16.mxu0 %v90_v8  ;;  %357 = vmatprep.subr.bf16.mxu1 %v177_v19  ;;  %v72_v36 = vld [vmem:[#allocation5 + $0x18] sm:$0xff]  ;;  %v174_v37 = vpack.c.bf16 %v162_v34, %v161_v33  ;;  %v70_v40 = vld [vmem:[#allocation5 + $0x8] sm:$0xff]  ;;  %v65_v42 = vld [vmem:[#allocation2 + $0x10] sm:$0xff] }
  0x2f   :  { %v86_v38 = vpack.c.bf16 %v72_v36, %v71_v35  ;;  %v85_v41 = vpack.c.bf16 %v70_v40, %v69_v39  ;;  %v66_v43 = vld [vmem:[#allocation2 + $0x18] sm:$0xff]  ;;  %v159_v45 = vld [vmem:[#allocation7 + $0x20] sm:$0xff]  ;;  %v160_v46 = vld [vmem:[#allocation7 + $0x28] sm:$0xff] }
  0x30   :  { %v68_v44 = vpack.c.bf16 %v66_v43, %v65_v42  ;;  %v173_v47 = vpack.c.bf16 %v160_v46, %v159_v45  ;;  %v157_v48 = vld [vmem:[#allocation7 + $0x10] sm:$0xff]  ;;  %v158_v49 = vld [vmem:[#allocation7 + $0x18] sm:$0xff]  ;;  %v155_v51 = vld [vmem:[#allocation7] sm:$0xff] }
  0x31   :  { %340 = vmatpush3.bf16.msra.mxu0 %v90_v8  ;;  %358 = vmatpush3.bf16.msra.mxu1 %v177_v19  ;;  %v172_v50 = vpack.c.bf16 %v158_v49, %v157_v48  ;;  %v156_v52 = vld [vmem:[#allocation7 + $0x8] sm:$0xff]  ;;  %v313_v56 = vld [vmem:[%s551_s2] ss:$0 sm:$0xff]  ;;  %s488_s2 = smov [#allocation8]  }
  0x32   :  { %341 = vmatprep.subr.bf16.mxu0 %v89_v20  ;;  %359 = vmatprep.subr.bf16.mxu1 %v176_v25  ;;  %v171_v53 = vpack.c.bf16 %v156_v52, %v155_v51  ;;  %v314_v5 = vld [vmem:[%s553_s4] ss:$0 sm:$0xff]  ;;  %s300_s4 = sshll.u32 %s488_s2, 4  ;;  %s301_s4 = int_to_ptr.vmem [resolvable:$true] %s300_s4 }
  0x33   :  { %s457_s11 = scalar_lea.vmem %s301_s4, 512  ;;  %p462_p2 = scmp.lt.s32.totalorder %s301_s4, %s301_s4 }
  0x34   :  { %p458_p1 = scmp.ne.s32.totalorder %s301_s4, %s457_s11  ;;  %p463_p3 = scmp.lt.s32.totalorder %s457_s11, %s457_s11 }
  0x35   :  { %342 = vmatpush3.bf16.msra.mxu0 %v89_v20  ;;  %360 = vmatpush3.bf16.msra.mxu1 %v176_v25 }
  0x36   :  { %343 = vmatprep.subr.bf16.mxu0 %v88_v26  ;;  %361 = vmatprep.subr.bf16.mxu1 %v175_v31  ;;  %p464_p4 = por %p463_p3, %p462_p2 }
  0x38   :  { %p465_p5 = pnand %p464_p4, %p458_p1 }
  0x39   :  { %344 = vmatpush3.bf16.msra.mxu0 %v88_v26  ;;  %362 = vmatpush3.bf16.msra.mxu1 %v175_v31 }
  0x3a   :  { %345 = vmatprep.subr.bf16.mxu0 %v87_v32  ;;  %363 = vmatprep.subr.bf16.mxu1 %v174_v37 }
  0x3d   :  { %346 = vmatpush3.bf16.msra.mxu0 %v87_v32  ;;  %364 = vmatpush3.bf16.msra.mxu1 %v174_v37 }
  0x3e   :  { %347 = vmatprep.subr.bf16.mxu0 %v86_v38  ;;  %365 = vmatprep.subr.bf16.mxu1 %v173_v47 }
  0x41   :  { %348 = vmatpush3.bf16.msra.mxu0 %v86_v38  ;;  %366 = vmatpush3.bf16.msra.mxu1 %v173_v47 }
  0x42   :  { %349 = vmatprep.subr.bf16.mxu0 %v85_v41  ;;  %367 = vmatprep.subr.bf16.mxu1 %v172_v50 }
  0x45   :  { %350 = vmatpush3.bf16.msra.mxu0 %v85_v41  ;;  %368 = vmatpush3.bf16.msra.mxu1 %v172_v50 }
  0x46   :  { %369 = vmatprep.subr.bf16.mxu1 %v171_v53 }
  0x48   :  { %352 = vmatmul.mubr.bf16.vlgmr.msra.gmra.mxu0 %v68_v44 }
  0x49   :  { %370 = vmatpush3.bf16.msra.mxu1 %v171_v53 }
 0x108   :  { %v353_v54 = vpop.f32.mrf.mxu0 }
 0x109   :  { %v143_v60 = vadd.f32 %v353_v54, %v313_v56 }
 0x10a   :  { %v134_v55 = vpop.f32.mrf.mxu0 }
 0x10b   :  { %v135_v58 = vadd.f32 %v313_v56, %v134_v55  ;;  %v151_v2 = vmax.f32 %v143_v60, 0.0 }
 0x10c   :  { %v354_v57 = vpop.f32.mrf.mxu0 }
 0x10d   :  { %v146_v59 = vadd.f32 %v354_v57, %v313_v56  ;;  %v149_v0 = vmax.f32 %v135_v58, 0.0 }
 0x10e   :  { %v137_v61 = vpop.f32.mrf.mxu0 }
 0x10f   :  { %v138_v62 = vadd.f32 %v313_v56, %v137_v61  ;;  %v152_v63 = vmax.f32 %v146_v59, 0.0 }
 0x111   :  { %v150_v1 = vmax.f32 %v138_v62, 0.0  ;;  %v154_v4 = vpack.c.bf16 %v152_v63, %v151_v2 }
 0x113   :  { %v153_v3 = vpack.c.bf16 %v150_v1, %v149_v0 }
 0x115   :  { %371 = vmatprep.mubr.bf16.mxu1 %v153_v3 }
 0x116   :  { %372 = vmatmul.mubr.bf16.vlgmr.msra.gmra.mxu1 %v154_v4 }
 0x1d6   :  { %v373_v6 = vpop.f32.mrf.mxu1 }
 0x1d7   :  { %v229_v7 = vadd.f32 %v373_v6, %v314_v5 }
 0x1d8   :  { %v220_v8 = vpop.f32.mrf.mxu1 }
 0x1d9   :  { %v221_v9 = vadd.f32 %v314_v5, %v220_v8  ;;  %v237_v10 = vmul.f32 %v229_v7, %v229_v7 }
 0x1da   :  { %v374_v11 = vpop.f32.mrf.mxu1 }
 0x1db   :  { %v232_v12 = vadd.f32 %v374_v11, %v314_v5  ;;  %243 = vadd.xlane.f32.xlu1 %v237_v10  ;;  %v235_v13 = vmul.f32 %v221_v9, %v221_v9 }
 0x1dc   :  { %v223_v14 = vpop.f32.mrf.mxu1 }
 0x1dd   :  { %v224_v15 = vadd.f32 %v314_v5, %v223_v14  ;;  %239 = vadd.xlane.f32.xlu0 %v235_v13  ;;  %v238_v16 = vmul.f32 %v232_v12, %v232_v12 }
 0x1df   :  { %245 = vadd.xlane.f32.xlu1 %v238_v16  ;;  %v236_v17 = vmul.f32 %v224_v15, %v224_v15 }
 0x1e1   :  { %241 = vadd.xlane.f32.xlu0 %v236_v17 }
 0x264   :  { %v244_v18 = vpop.xlane.xlu1 %243 }
 0x265   :  { %381 = vrsqrt.f32 %v244_v18  ;;  %vm263_vm0 = vcmp.eq.f32.partialorder %v244_v18, inf  ;;  %v266_v25 = vand.u32 2147483648, %v244_v18  ;;  %vm265_vm1 = vcmp.eq.f32.partialorder %v244_v18, 0.0 }
 0x266   :  { %v240_v19 = vpop.xlane.xlu0 %239 }
 0x267   :  { %383 = vrsqrt.f32 %v240_v19  ;;  %vm249_vm2 = vcmp.eq.f32.partialorder %v240_v19, inf  ;;  %v252_v30 = vand.u32 2147483648, %v240_v19  ;;  %vm251_vm3 = vcmp.eq.f32.partialorder %v240_v19, 0.0 }
 0x268   :  { %v246_v20 = vpop.xlane.xlu1 %245 }
 0x269   :  { %385 = vrsqrt.f32 %v246_v20  ;;  %vm270_vm4 = vcmp.eq.f32.partialorder %v246_v20, inf  ;;  %vm272_vm5 = vcmp.eq.f32.partialorder %v246_v20, 0.0  ;;  %v273_v36 = vand.u32 2147483648, %v246_v20 }
 0x26a   :  { %v242_v21 = vpop.xlane.xlu0 %241 }
 0x26b   :  { %387 = vrsqrt.f32 %v242_v21  ;;  %vm256_vm6 = vcmp.eq.f32.partialorder %v242_v21, inf  ;;  %v259_v41 = vand.u32 2147483648, %v242_v21  ;;  %vm258_vm7 = vcmp.eq.f32.partialorder %v242_v21, 0.0 }
 0x272   :  { %v382_v22 = vpop.eup %381 }
 0x273   :  { %v262_v23 = vmul.f32 %v382_v22, %v244_v18 }
 0x274   :  { %v384_v24 = vpop.eup %383 }
 0x275   :  { %v264_v26 = vsel %vm263_vm0, %v244_v18, %v262_v23  ;;  %v248_v27 = vmul.f32 %v384_v24, %v240_v19 }
 0x276   :  { %v386_v28 = vpop.eup %385  ;;  %v267_v29 = vsel %vm265_vm1, %v266_v25, %v264_v26 }
 0x277   :  { %v277_v31 = vadd.f32 1e-07, %v267_v29  ;;  %v250_v32 = vsel %vm249_vm2, %v240_v19, %v248_v27  ;;  %v269_v33 = vmul.f32 %v386_v28, %v246_v20 }
 0x278   :  { %v388_v34 = vpop.eup %387  ;;  %v253_v35 = vsel %vm251_vm3, %v252_v30, %v250_v32 }
 0x279   :  { %389 = vrcp.f32 %v277_v31  ;;  %v275_v37 = vadd.f32 1e-07, %v253_v35  ;;  %v271_v38 = vsel %vm270_vm4, %v246_v20, %v269_v33  ;;  %v255_v39 = vmul.f32 %v388_v34, %v242_v21 }
 0x27a   :  { %v274_v40 = vsel %vm272_vm5, %v273_v36, %v271_v38 }
 0x27b   :  { %391 = vrcp.f32 %v275_v37  ;;  %v278_v42 = vadd.f32 1e-07, %v274_v40  ;;  %v257_v43 = vsel %vm256_vm6, %v242_v21, %v255_v39 }
 0x27c   :  { %v260_v44 = vsel %vm258_vm7, %v259_v41, %v257_v43 }
 0x27d   :  { %393 = vrcp.f32 %v278_v42  ;;  %v276_v45 = vadd.f32 1e-07, %v260_v44 }
 0x27f   :  { %395 = vrcp.f32 %v276_v45 }
 0x286   :  { %v390_v46 = vpop.eup %389 }
 0x287   :  { %v289_v47 = vmul.f32 %v390_v46, %v229_v7 }
 0x288   :  { %v392_v48 = vpop.eup %391 }
 0x289   :  { %v287_v49 = vmul.f32 %v392_v48, %v221_v9  ;;  %293 = vst [vmem:[#allocation8 + $0x10] sm:$0xff] %v289_v47 }
 0x28a   :  { %v394_v50 = vpop.eup %393 }
 0x28b   :  { %v290_v51 = vmul.f32 %v394_v50, %v232_v12  ;;  %291 = vst [vmem:[#allocation8] sm:$0xff] %v287_v49 }
 0x28c   :  { %v396_v52 = vpop.eup %395 }
 0x28d   :  { %v288_v53 = vmul.f32 %v396_v52, %v224_v15  ;;  %294 = vst [vmem:[#allocation8 + $0x18] sm:$0xff] %v290_v51 }
 0x28f   :  { %292 = vst [vmem:[#allocation8 + $0x8] sm:$0xff] %v288_v53 }
 0x290   :  { %468 = shalt.err (!%p465_p5)
}
 0x291   :  { %306 = dma.vmem_to_hbm [thread:$0]  %s301_s4, 512, %s554_s5, [#allocation4], %s485_s23, %s485_s23, %s486_s24  }
 0x292   :  { %481 = dma.done.wait [#allocation4], 512  }
 0x293   :  { %482 = vsyncadd [#allocation4], 4294966784 }
 0x294   :  { %310 = vsyncpa [#allocation3], 1 }
 0x295   :  { %311 = vsyncpa [#allocation6], 1 }
 0x296   :  { %312 = vsyncpa [#allocation4], 1 }

</bundles_post_ra>
